<compile_context>
chip_gen: v7x
topology: tpu7x:2x2x1
jax: 0.10.0
libtpu: 0.0.40
codegen_flags: <defaults>
</compile_context>

<pallas_src>
import jax
import jax.numpy as jnp
from jax.experimental import pallas as pl
from jax.experimental.pallas import tpu as pltpu


def _round_up(x, m):
    return ((x + m - 1) // m) * m


def mlp_prediction_kernel(zb_ref, xq_ref, w1x_ref, w2_ref, b2_ref, o_ref):
    # zb_ref : (tB, 1, Hp)     f32, per-batch z @ W1_z + b1 (precomputed, grid-invariant)
    # xq_ref : (tB, tN, x_dim) native input dtype (cast done in-kernel)
    # w1x_ref: (x_dim, Hp)     compute dtype, columns zero-padded H..Hp
    # w2_ref : (Hp, y_dim)     compute dtype, rows zero-padded H..Hp
    # b2_ref : (1, y_dim)      f32
    # o_ref  : (tB, tN, y_dim)
    tB, tN, x_dim = xq_ref.shape
    w2 = w2_ref[...]
    b2 = b2_ref[...]
    use_rank1 = x_dim <= 8                      # skinny contraction -> VPU rank-1 path
    if use_rank1:
        w1x = w1x_ref[...].astype(jnp.float32)  # tiny; cast once, f32 VPU math everywhere
    else:
        w1x = w1x_ref[...]

    # Static unroll over the (small) batch tile; each iteration is a full (tN, Hp) slab.
    for b in range(tB):
        xb = xq_ref[b]          # (tN, x_dim)
        zb = zb_ref[b]          # (1, Hp), f32 -> broadcasts over the tN rows

        if use_rank1:
            # h = zb + sum_k x[:, k] * W1_x[k, :]  -- K<=8 unrolled broadcast-mul-adds
            # on the VPU/XLU (MXU stays free for the second layer, no skinny relayout).
            xb32 = xb.astype(jnp.float32)
            h = zb
            for k in range(x_dim):
                h = h + xb32[:, k:k + 1] * w1x[k:k + 1, :]
        else:
            h = jnp.dot(xb.astype(w1x.dtype), w1x,
                        preferred_element_type=jnp.float32) + zb

        h = jnp.maximum(h, 0.0)  # ReLU (f32)

        # Second linear on the MXU: (tN, Hp) @ (Hp, y_dim), f32 accumulation.
        y = jnp.dot(h.astype(w2.dtype), w2,
                    preferred_element_type=jnp.float32) + b2
        o_ref[b] = y.astype(o_ref.dtype)   # masked vst (y_dim == full last dim)


def mlp_prediction(z, x_q, w1, b1, w2, b2, *, compute_dtype=None, out_dtype=None,
                   n_tile=2048, rows_per_step=8192, max_batch_tile=32):
    """MLPPrediction forward.

    z: (B, z_dim), x_q: (B, N, x_dim), w1: (z_dim+x_dim, H), b1: (H,),
    w2: (H, y_dim), b2: (y_dim,).  Returns (B, N, y_dim).

    compute_dtype: dtype of the MXU/weight operands.  Pass jnp.bfloat16 on v6e/v7x for
        ~2x MXU throughput and half the weight/x_q VMEM; accumulation stays f32.
        Default (None) keeps the input dtype so the f32 path is exact.
    out_dtype: output dtype (default x_q.dtype).  bf16 halves output HBM write bytes
        if the consumer tolerates it.
    n_tile / rows_per_step / max_batch_tile: tiling knobs; defaults keep per-step
        VMEM ~25 MiB (well under v7x's 64 MiB) and per-step bytes far above the
        grid-step overhead floor.
    """
    B, z_dim = z.shape
    _, N, x_dim = x_q.shape
    H = w1.shape[1]
    y_dim = w2.shape[1]
    if compute_dtype is None:
        compute_dtype = x_q.dtype
    if out_dtype is None:
        out_dtype = x_q.dtype

    Hp = _round_up(H, 128)   # lane-dense hidden activations

    # Split W1 rows: first z_dim rows multiply z, remaining x_dim rows multiply x_q
    # (matches torch.cat([z, x_q], dim=-1) ordering).
    w1_z = w1[:z_dim, :]
    w1_x = w1[z_dim:, :]

    # Hoist the z path: per-batch bias zb = z @ W1_z + b1 (tiny matmul left to XLA),
    # f32, zero-padded to Hp.  Zero padding is exact: padded W1_x cols / zb entries
    # give h = 0 there and padded W2 rows contribute 0.
    zb = (z.astype(jnp.float32) @ w1_z.astype(jnp.float32)
          + b1.astype(jnp.float32))                              # (B, H)
    zb = jnp.pad(zb, ((0, 0), (0, Hp - H))).reshape(B, 1, Hp)

    w1x_p = jnp.pad(w1_x, ((0, 0), (0, Hp - H))).astype(compute_dtype)   # (x_dim, Hp)
    w2_p = jnp.pad(w2, ((0, Hp - H), (0, 0))).astype(compute_dtype)      # (Hp, y_dim)
    b2_p = b2.astype(jnp.float32).reshape(1, y_dim)

    # ---- tile selection -------------------------------------------------------------
    in_bytes = jnp.dtype(x_q.dtype).itemsize
    sub_min = 8 if in_bytes >= 4 else 16       # sublane tile (16 for bf16 operands)
    tN = N if N <= n_tile else max(sub_min, (n_tile // sub_min) * sub_min)
    tB = min(B, max(1, min(max_batch_tile, rows_per_step // max(tN, 1))))
    # v7x has 2 TensorCores sharded over the "parallel" grid: make sure there are at
    # least 2 grid steps when there is enough work to split.
    if pl.cdiv(B, tB) * pl.cdiv(N, tN) < 2 and B * N >= 2 * sub_min:
        if B >= 2:
            tB = max(1, tB // 2)
        elif N >= 2 * sub_min:
            tN = max(sub_min, _round_up(tN // 2, sub_min))
    grid = (pl.cdiv(B, tB), pl.cdiv(N, tN))

    # ---- VMEM budget (lane-padded tiles, double-buffered) ----------------------------
    out_bytes = jnp.dtype(out_dtype).itemsize
    c_bytes = jnp.dtype(compute_dtype).itemsize
    rows = tB * _round_up(tN, 8)
    est = 2 * rows * _round_up(x_dim, 128) * in_bytes          # x_q tiles
    est += 2 * rows * _round_up(y_dim, 128) * out_bytes        # output tiles
    est += 2 * rows * Hp * 4                                   # hidden activations (f32)
    est += 2 * tB * 8 * Hp * 4                                 # zb tiles
    est += 2 * (_round_up(x_dim, 8) * Hp + Hp * _round_up(y_dim, 128)) * c_bytes
    est += 2 * 8 * _round_up(y_dim, 128) * 4                   # b2
    vmem_limit = int(min(max(est + (4 << 20), 16 << 20), 48 << 20))

    out = pl.pallas_call(
        mlp_prediction_kernel,
        out_shape=jax.ShapeDtypeStruct((B, N, y_dim), out_dtype),
        grid_spec=pltpu.PrefetchScalarGridSpec(
            num_scalar_prefetch=0,
            grid=grid,
            in_specs=[
                pl.BlockSpec((tB, 1, Hp), lambda b, n: (b, 0, 0)),       # zb
                pl.BlockSpec((tB, tN, x_dim), lambda b, n: (b, n, 0)),   # x_q tile
                pl.BlockSpec((x_dim, Hp), lambda b, n: (0, 0)),          # W1_x (constant)
                pl.BlockSpec((Hp, y_dim), lambda b, n: (0, 0)),          # W2   (constant)
                pl.BlockSpec((1, y_dim), lambda b, n: (0, 0)),           # b2   (constant)
            ],
            out_specs=pl.BlockSpec((tB, tN, y_dim), lambda b, n: (b, n, 0)),
        ),
        compiler_params=pltpu.CompilerParams(
            dimension_semantics=("parallel", "parallel"),
            vmem_limit_bytes=vmem_limit,
        ),
    )(zb, x_q, w1x_p, w2_p, b2_p)
    return out


def reference(z, x_q, w1, b1, w2, b2):
    B, N, _ = x_q.shape
    zr = jnp.broadcast_to(z[:, None, :], (B, N, z.shape[-1]))
    cat = jnp.concatenate([zr, x_q], axis=-1)
    h = jnp.maximum(cat @ w1 + b1, 0.0)
    return h @ w2 + b2


if __name__ == "__main__":
    # Small shapes consistent with the module.
    B, N = 2, 8
    x_dim, y_dim, z_dim, hidden_dim = 4, 3, 4, 32

    key = jax.random.PRNGKey(0)
    k_z, k_x, k_w1, k_b1, k_w2, k_b2 = jax.random.split(key, 6)

    z = jax.random.normal(k_z, (B, z_dim), dtype=jnp.float32)
    x_q = jax.random.normal(k_x, (B, N, x_dim), dtype=jnp.float32)

    in_dim = x_dim + z_dim
    # deterministic synthetic parameters (uniform, roughly like torch Linear init)
    w1 = jax.random.uniform(k_w1, (in_dim, hidden_dim), minval=-1.0, maxval=1.0) / jnp.sqrt(in_dim)
    b1 = jax.random.uniform(k_b1, (hidden_dim,), minval=-1.0, maxval=1.0) / jnp.sqrt(in_dim)
    w2 = jax.random.uniform(k_w2, (hidden_dim, y_dim), minval=-1.0, maxval=1.0) / jnp.sqrt(hidden_dim)
    b2 = jax.random.uniform(k_b2, (y_dim,), minval=-1.0, maxval=1.0) / jnp.sqrt(hidden_dim)

    y_q = mlp_prediction(z, x_q, w1, b1, w2, b2)
    y_q = jax.block_until_ready(y_q)

    y_ref = reference(z, x_q, w1, b1, w2, b2)
    assert y_q.shape == (B, N, y_dim)
    assert jnp.allclose(y_q, y_ref, atol=1e-5, rtol=1e-5), float(jnp.max(jnp.abs(y_q - y_ref)))

    print("KERNEL_OK")
</pallas_src>

<mosaic_0001>
module attributes {stable_mosaic.version = 11 : i64} {
  func.func @mlp_prediction_kernel(%arg0: i32, %arg1: i32, %arg2: memref<1x1x128xf32, #tpu.memory_space<vmem>>, %arg3: memref<1x8x4xf32, #tpu.memory_space<vmem>>, %arg4: memref<4x128xf32, #tpu.memory_space<vmem>>, %arg5: memref<128x3xf32, #tpu.memory_space<vmem>>, %arg6: memref<1x3xf32, #tpu.memory_space<vmem>>, %arg7: memref<1x8x3xf32, #tpu.memory_space<vmem>>) attributes {dimension_semantics = [#tpu.dimension_semantics<parallel>, #tpu.dimension_semantics<parallel>], iteration_bounds = array<i64: 2, 1>, scalar_prefetch = 0 : i64, scratch_operands = 0 : i64, tpu.core_type = #tpu.core_type<tc>, window_params = [{transform_indices = @transform_0, window_bounds = array<i64: 1, 1, 128>}, {transform_indices = @transform_1, window_bounds = array<i64: 1, 8, 4>}, {pipeline_mode = #tpu.pipeline_mode<synchronous>, transform_indices = @transform_2, window_bounds = array<i64: 4, 128>}, {pipeline_mode = #tpu.pipeline_mode<synchronous>, transform_indices = @transform_3, window_bounds = array<i64: 128, 3>}, {pipeline_mode = #tpu.pipeline_mode<synchronous>, transform_indices = @transform_4, window_bounds = array<i64: 1, 3>}, {transform_indices = @transform_5, window_bounds = array<i64: 1, 8, 3>}]} {
    %c0 = arith.constant 0 : index
    %c0_0 = arith.constant 0 : index
    %0 = vector.load %arg5[%c0, %c0_0] : memref<128x3xf32, #tpu.memory_space<vmem>>, vector<128x3xf32>
    %c0_1 = arith.constant 0 : index
    %c0_2 = arith.constant 0 : index
    %1 = vector.load %arg6[%c0_1, %c0_2] : memref<1x3xf32, #tpu.memory_space<vmem>>, vector<1x3xf32>
    %c0_3 = arith.constant 0 : index
    %c0_4 = arith.constant 0 : index
    %2 = vector.load %arg4[%c0_3, %c0_4] : memref<4x128xf32, #tpu.memory_space<vmem>>, vector<4x128xf32>
    %c0_5 = arith.constant 0 : index
    %c0_6 = arith.constant 0 : index
    %c0_7 = arith.constant 0 : index
    %3 = vector.load %arg3[%c0_5, %c0_6, %c0_7] : memref<1x8x4xf32, #tpu.memory_space<vmem>>, vector<1x8x4xf32>
    %4 = vector.shape_cast %3 : vector<1x8x4xf32> to vector<8x4xf32>
    %c0_8 = arith.constant 0 : index
    %c0_9 = arith.constant 0 : index
    %c0_10 = arith.constant 0 : index
    %5 = vector.load %arg2[%c0_8, %c0_9, %c0_10] : memref<1x1x128xf32, #tpu.memory_space<vmem>>, vector<1x1x128xf32>
    %6 = vector.shape_cast %5 : vector<1x1x128xf32> to vector<1x128xf32>
    %7 = vector.extract_strided_slice %4 {offsets = [0, 0], sizes = [8, 1], strides = [1, 1]} : vector<8x4xf32> to vector<8x1xf32>
    %8 = vector.extract_strided_slice %2 {offsets = [0, 0], sizes = [1, 128], strides = [1, 1]} : vector<4x128xf32> to vector<1x128xf32>
    %9 = vector.broadcast %7 : vector<8x1xf32> to vector<8x128xf32>
    %10 = vector.broadcast %8 : vector<1x128xf32> to vector<8x128xf32>
    %11 = arith.mulf %9, %10 : vector<8x128xf32>
    %12 = vector.broadcast %6 : vector<1x128xf32> to vector<8x128xf32>
    %13 = arith.addf %12, %11 : vector<8x128xf32>
    %14 = vector.extract_strided_slice %4 {offsets = [0, 1], sizes = [8, 1], strides = [1, 1]} : vector<8x4xf32> to vector<8x1xf32>
    %15 = vector.extract_strided_slice %2 {offsets = [1, 0], sizes = [1, 128], strides = [1, 1]} : vector<4x128xf32> to vector<1x128xf32>
    %16 = vector.broadcast %14 : vector<8x1xf32> to vector<8x128xf32>
    %17 = vector.broadcast %15 : vector<1x128xf32> to vector<8x128xf32>
    %18 = arith.mulf %16, %17 : vector<8x128xf32>
    %19 = arith.addf %13, %18 : vector<8x128xf32>
    %20 = vector.extract_strided_slice %4 {offsets = [0, 2], sizes = [8, 1], strides = [1, 1]} : vector<8x4xf32> to vector<8x1xf32>
    %21 = vector.extract_strided_slice %2 {offsets = [2, 0], sizes = [1, 128], strides = [1, 1]} : vector<4x128xf32> to vector<1x128xf32>
    %22 = vector.broadcast %20 : vector<8x1xf32> to vector<8x128xf32>
    %23 = vector.broadcast %21 : vector<1x128xf32> to vector<8x128xf32>
    %24 = arith.mulf %22, %23 : vector<8x128xf32>
    %25 = arith.addf %19, %24 : vector<8x128xf32>
    %26 = vector.extract_strided_slice %4 {offsets = [0, 3], sizes = [8, 1], strides = [1, 1]} : vector<8x4xf32> to vector<8x1xf32>
    %27 = vector.extract_strided_slice %2 {offsets = [3, 0], sizes = [1, 128], strides = [1, 1]} : vector<4x128xf32> to vector<1x128xf32>
    %28 = vector.broadcast %26 : vector<8x1xf32> to vector<8x128xf32>
    %29 = vector.broadcast %27 : vector<1x128xf32> to vector<8x128xf32>
    %30 = arith.mulf %28, %29 : vector<8x128xf32>
    %31 = arith.addf %25, %30 : vector<8x128xf32>
    %cst = arith.constant 0.000000e+00 : f32
    %32 = vector.broadcast %cst : f32 to vector<8x128xf32>
    %33 = arith.maximumf %31, %32 : vector<8x128xf32>
    %cst_11 = arith.constant dense<0.000000e+00> : vector<8x3xf32>
    %34 = tpu.matmul %33, %0, %cst_11 {dimension_numbers = #tpu.dot_dimension_numbers<[1], [0], [0], [1], [0, 0, 1, 1], [], []>} : vector<8x128xf32>, vector<128x3xf32>, vector<8x3xf32> -> vector<8x3xf32>
    %35 = vector.broadcast %1 : vector<1x3xf32> to vector<8x3xf32>
    %36 = arith.addf %34, %35 : vector<8x3xf32>
    %c0_12 = arith.constant 0 : index
    %c0_13 = arith.constant 0 : index
    %c0_14 = arith.constant 0 : index
    %37 = vector.load %arg7[%c0_12, %c0_13, %c0_14] : memref<1x8x3xf32, #tpu.memory_space<vmem>>, vector<1x8x3xf32>
    %38 = vector.shape_cast %37 : vector<1x8x3xf32> to vector<8x3xf32>
    %39 = vector.shape_cast %36 : vector<8x3xf32> to vector<1x8x3xf32>
    tpu.vector_store %arg7[%c0_12, %c0_13, %c0_14], %39 {strides = array<i32>} : memref<1x8x3xf32, #tpu.memory_space<vmem>>, vector<1x8x3xf32>,
    return
  }
  func.func @transform_0(%arg0: i32, %arg1: i32) -> (i32, i32, i32) {
    %c0_i32 = arith.constant 0 : i32
    %c0_i32_0 = arith.constant 0 : i32
    %c0_i32_1 = arith.constant 0 : i32
    return %arg0, %c0_i32, %c0_i32_0 : i32, i32, i32
  }
  func.func @transform_1(%arg0: i32, %arg1: i32) -> (i32, i32, i32) {
    %c0_i32 = arith.constant 0 : i32
    %c0_i32_0 = arith.constant 0 : i32
    return %arg0, %arg1, %c0_i32 : i32, i32, i32
  }
  func.func @transform_2(%arg0: i32, %arg1: i32) -> (i32, i32) {
    %c0_i32 = arith.constant 0 : i32
    %c0_i32_0 = arith.constant 0 : i32
    %c0_i32_1 = arith.constant 0 : i32
    return %c0_i32, %c0_i32_0 : i32, i32
  }
  func.func @transform_3(%arg0: i32, %arg1: i32) -> (i32, i32) {
    %c0_i32 = arith.constant 0 : i32
    %c0_i32_0 = arith.constant 0 : i32
    %c0_i32_1 = arith.constant 0 : i32
    return %c0_i32, %c0_i32_0 : i32, i32
  }
  func.func @transform_4(%arg0: i32, %arg1: i32) -> (i32, i32) {
    %c0_i32 = arith.constant 0 : i32
    %c0_i32_0 = arith.constant 0 : i32
    %c0_i32_1 = arith.constant 0 : i32
    return %c0_i32, %c0_i32_0 : i32, i32
  }
  func.func @transform_5(%arg0: i32, %arg1: i32) -> (i32, i32, i32) {
    %c0_i32 = arith.constant 0 : i32
    %c0_i32_0 = arith.constant 0 : i32
    return %arg0, %arg1, %c0_i32 : i32, i32, i32
  }
}

</mosaic_0001>

<bundles_post_ra>
// kernel: tpu_custom_call.1
= control target key start
LH: loop header
LB: loop body
LE: loop exit
PB: predicated region body
PF: predicated region fallthrough
CT: control target
= control target key end

     0   :  { %s678_s18 = smov 0   ;;  %s680_s19 = smov 0   ;;  %s776_s0 = inlined_call_operand.vmem [shape: f32[2,1,128], index: 0, kind: input, shape index: {}]   ;;  %s777_s1 = inlined_call_operand.vmem [shape: f32[2,8,4], index: 1, kind: input, shape index: {}]   ;;  %s778_s2 = inlined_call_operand.vmem [shape: f32[4,128], index: 2, kind: input, shape index: {}]   ;;  %s779_s3 = inlined_call_operand.vmem [shape: f32[128,3], index: 3, kind: input, shape index: {}]   ;;  %s780_s4 = inlined_call_operand.vmem [shape: f32[1,3], index: 4, kind: input, shape index: {}]   ;;  %s781_s5 = inlined_call_operand.vmem [shape: f32[2,8,3], index: 5, kind: output, shape index: {}]  }
   0x1   :  { %s682_s20 = smov 0  }
   0x2 LB: > { %s27_s21 = sadd.s32 1, %s635_s19  ;;  %p498_p0 = scmp.ge.s32.totalorder %s639_s20, 1  ;;  %s639_s20 = sphi %s682_s20, %s15_s20   ;;  %s635_s19 = sphi %s680_s19, %s783_s19   ;;  %s631_s18 = sphi %s678_s18, %s782_s18  }
   0x3   : > { %p29_p1 = scmp.ge.s32.totalorder %s27_s21, 2  ;;  %p213_p2 = scmp.lt.s32.totalorder %s639_s20, 3 }
   0x5   : > { %s785_s21 = smov (%p29_p1, %s27_s21), 0  ;;  %p214_p3 = pnand %p498_p0, %p213_p2 }
   0x6   : > { %p248_p4 = scmp.lt.s32.totalorder (!%p214_p3), %s631_s18, 1  ;;  %v265_v0 = vld [vmem:[%s779_s3] sm:$0xff] (!%p214_p3)  ;;  %v641_v1 = vmov (!%p214_p3), 0   ;;  %v642_v2 = vmov (!%p214_p3), 2   ;;  %v266_v3 = vld [vmem:[%s779_s3 + $0x8] sm:$0xff] (!%p214_p3)  ;;  %v267_v4 = vld [vmem:[%s779_s3 + $0x10] sm:$0xff] (!%p214_p3)  ;;  %v290_v31 = vlaneseq (!%p214_p3) }
   0x7   : > { %217 = sbr.rel (%p214_p3) target bundleno = 376 (0x178), region = 40  ;;  %612 = vset.pattern.permute.xlu0 (!%p214_p3), %v641_v1  ;;  %614 = vset.pattern.permute.xlu1 (!%p214_p3), %v642_v2  ;;  %v268_v5 = vld [vmem:[%s779_s3 + $0x18] sm:$0xff] (!%p214_p3)  ;;  %v643_v6 = vmov (!%p214_p3), 0.0|0.0   ;;  %v558_v7 = vpack.c.bf16 (!%p214_p3), %v266_v3, %v265_v0  ;;  %v269_v10 = vld [vmem:[%s779_s3 + $0x20] sm:$0xff] (!%p214_p3)  ;;  %v270_v11 = vld [vmem:[%s779_s3 + $0x28] sm:$0xff] (!%p214_p3)  ;;  %v644_v15 = vmov (!%p214_p3), 1  }
   0x8   : > { %557 = vmatprep.subr.bf16.mxu0 (!%p214_p3), %v643_v6  ;;  %v561_v8 = vpack.c.bf16 (!%p214_p3), %v268_v5, %v267_v4  ;;  %v564_v12 = vpack.c.bf16 (!%p214_p3), %v270_v11, %v269_v10  ;;  %v271_v13 = vld [vmem:[%s779_s3 + $0x30] sm:$0xff] (!%p214_p3)  ;;  %v272_v14 = vld [vmem:[%s779_s3 + $0x38] sm:$0xff] (!%p214_p3)  ;;  %v645_v16 = vmov (!%p214_p3), 3   ;;  %v273_v18 = vld [vmem:[%s779_s3 + $0x40] sm:$0xff] (!%p214_p3)  ;;  %vm646_vm0 = vmmov (!%p214_p3), 0  }
   0x9   : > { %559 = vmatpush3.bf16.msra.mxu0 (!%p214_p3), %v558_v7  ;;  %v567_v17 = vpack.c.bf16 (!%p214_p3), %v272_v14, %v271_v13  ;;  %v274_v19 = vld [vmem:[%s779_s3 + $0x48] sm:$0xff] (!%p214_p3)  ;;  %v275_v21 = vld [vmem:[%s779_s3 + $0x50] sm:$0xff] (!%p214_p3)  ;;  %v276_v22 = vld [vmem:[%s779_s3 + $0x58] sm:$0xff] (!%p214_p3)  ;;  %v647_v24 = vmov (!%p214_p3), 0.0   ;;  %v291_v32 = vshrl.u32 (!%p214_p3), %v290_v31, 7  ;;  %vm409_vm1 = vcmask (!%p214_p3), 23552  }
   0xa   : > { %560 = vmatprep.subr.bf16.mxu0 (!%p214_p3), %v643_v6  ;;  %v570_v20 = vpack.c.bf16 (!%p214_p3), %v274_v19, %v273_v18  ;;  %v573_v23 = vpack.c.bf16 (!%p214_p3), %v276_v22, %v275_v21  ;;  %554 = vmatprep.mubr.msk.f32.mxu0 (!%p214_p3), %vm646_vm0, %v647_v24  ;;  %v277_v25 = vld [vmem:[%s779_s3 + $0x60] sm:$0xff] (!%p214_p3)  ;;  %v278_v26 = vld [vmem:[%s779_s3 + $0x68] sm:$0xff] (!%p214_p3)  ;;  %v279_v28 = vld [vmem:[%s779_s3 + $0x70] sm:$0xff] (!%p214_p3) }
   0xb   : > { %v576_v27 = vpack.c.bf16 (!%p214_p3), %v278_v26, %v277_v25  ;;  %v280_v29 = vld [vmem:[%s779_s3 + $0x78] sm:$0xff] (!%p214_p3)  ;;  %v292_v33 = vsub.s32 (!%p214_p3), 0, %v291_v32  ;;  %v282_v34 = vld [vmem:[%s778_s2] sm:$0xf] (!%p214_p3)  ;;  %v308_v36 = vsub.s32 (!%p214_p3), 1, %v291_v32  ;;  %v318_v38 = vsub.s32 (!%p214_p3), 2, %v291_v32 }
   0xc   : > { %v579_v30 = vpack.c.bf16 (!%p214_p3), %v280_v29, %v279_v28  ;;  %v328_v40 = vsub.s32 (!%p214_p3), 3, %v291_v32  ;;  %v502_v56 = vld [vmem:[%s780_s4] ss:$0 sm:$0xff] (!%p214_p3) }
   0xd   : > { %562 = vmatpush3.bf16.msra.mxu0 (!%p214_p3), %v561_v8  ;;  %v293_v35 = vrot.slane (!%p214_p3), %v282_v34, %v292_v33  ;;  %v309_v42 = vrot.slane (!%p214_p3), %v282_v34, %v308_v36  ;;  %v319_v44 = vrot.slane (!%p214_p3), %v282_v34, %v318_v38 }
   0xe   : > { %s787_s18 = smov (!%p248_p4, %s631_s18), 1  ;;  %563 = vmatprep.subr.bf16.mxu0 %v643_v6  ;;  %v329_v45 = vrot.slane %v282_v34, %v328_v40 }
   0xf   : > { %s499_s30 = sshll.u32 %s787_s18, 3  ;;  %s250_s17 = scalar_lea.vmem %s776_s0, %s787_s18 }
  0x10   : > { %s257_s8 = scalar_lea.vmem %s777_s1, %s499_s30  ;;  %v501_v43 = vld [vmem:[%s250_s17] ss:$0 sm:$0xff]  ;;  %s264_s26 = scalar_lea.vmem %s781_s5, %s499_s30 }
  0x11   : > { %v283_v9 = vld [vmem:[%s257_s8] sm:$0xff]  ;;  %565 = vmatpush3.bf16.msra.mxu0 %v564_v12 }
  0x12   : > { %287 = vperm.xlu0 %612, %v283_v9   ;;  %313 = vperm.xlu1 %614, %v283_v9  }
  0x13   : > { %566 = vmatprep.subr.bf16.mxu0 %v643_v6 }
  0x15   : > { %568 = vmatpush3.bf16.msra.mxu0 %v567_v17 }
  0x16   : > { %613 = vset.pattern.permute.xlu0 %v644_v15  ;;  %615 = vset.pattern.permute.xlu1 %v645_v16 }
  0x17   : > { %303 = vperm.xlu0 %613, %v283_v9   ;;  %323 = vperm.xlu1 %615, %v283_v9  }
  0x18   : > { %569 = vmatprep.subr.bf16.mxu0 %v643_v6 }
  0x19   : > { %571 = vmatpush3.bf16.msra.mxu0 %v570_v20 }
  0x1a   : > { %572 = vmatprep.subr.bf16.mxu0 %v643_v6 }
  0x1b   : > { %616 = vset.pattern.permute.xlu0 %v645_v16 }
  0x1d   : > { %574 = vmatpush3.bf16.msra.mxu0 %v573_v23 }
  0x1e   : > { %575 = vmatprep.subr.bf16.mxu0 %v643_v6 }
  0x21   : > { %577 = vmatpush3.bf16.msra.mxu0 %v576_v27 }
  0x22   : > { %578 = vmatprep.subr.bf16.mxu0 %v643_v6 }
  0x25   : > { %580 = vmatpush3.bf16.msra.mxu0 %v579_v30 }
  0x91   : > { %v288_v37 = vpop.permute.xlu0 %287  ;;  %v314_v39 = vpop.permute.xlu1 %313 }
  0x92   : > { %v294_v41 = vmul.f32 %v293_v35, %v288_v37  ;;  %v320_v50 = vmul.f32 %v319_v44, %v314_v39 }
  0x94   : > { %v301_v48 = vadd.f32 %v501_v43, %v294_v41 }
  0x96   : > { %v304_v46 = vpop.permute.xlu0 %303  ;;  %v324_v47 = vpop.permute.xlu1 %323 }
  0x97   : > { %v310_v49 = vmul.f32 %v309_v42, %v304_v46  ;;  %v330_v52 = vmul.f32 %v329_v45, %v324_v47 }
  0x99   : > { %v311_v51 = vadd.f32 %v310_v49, %v301_v48 }
  0x9b   : > { %v321_v53 = vadd.f32 %v320_v50, %v311_v51 }
  0x9d   : > { %v331_v54 = vadd.f32 %v330_v52, %v321_v53 }
  0x9f   : > { %v332_v55 = vmax.f32 %v331_v54, 0.0 }
  0xa1   : > { %555 = vmatmul.mubr.f32.vlgmr.msra.gmra.mrb[0].mxu0 %v332_v55 }
 0x174   : > { %v405_v57 = vpop.f32.mrb[0].mxu0 }
 0x175   : > { %v406_v58 = vadd.f32 %v502_v56, %v405_v57  ;;  %v556_v59 = vpop.f32.mrb[1].mxu0 }
 0x177   : > { %410 = vst.msk [vmem:[%s264_s26] sm:$0xff] %vm409_vm1, %v406_v58 }
 0x178 PF: > { %s15_s20 = sadd.s32 1, %s639_s20   ;;  %s782_s18 = smov %s635_s19 }
 0x179   : > { %p12_p5 = scmp.ge.s32.totalorder %s15_s20, 4   ;;  %s783_s19 = smov %s785_s21 }
 0x17b   :  { %14 = sbr.rel (!%p12_p5) target bundleno = 2 (0x2), region = 73 }

</bundles_post_ra>
